<compile_context>
chip_gen: v7x
topology: tpu7x:2x2x1
jax: 0.10.0
libtpu: 0.0.40
codegen_flags: <defaults>
</compile_context>

<pallas_src>
import jax
import jax.numpy as jnp
from jax import lax
from jax.experimental import pallas as pl
from jax.experimental.pallas import tpu as pltpu


# --------------------------------------------------------------------------------
# tiling helpers
# --------------------------------------------------------------------------------
def _round_up(x, m):
    return -(-x // m) * m


def _vmem_limit_bytes():
    """Generation-aware scoped-VMEM limit: half of physical VMEM, capped at 64 MiB.

    v5e/v6e (128 MiB) -> 64 MiB, v7x (64 MiB) -> 32 MiB.  Falls back to the
    conservative (v7x-level) value if the hardware query is unavailable.
    """
    try:
        info = pltpu.get_tpu_info()
        cap = int(getattr(info, "vmem_capacity_bytes", 64 << 20))
    except Exception:
        cap = 64 << 20
    return max(16 << 20, min(cap // 2, 64 << 20))


def _tile_footprint_bytes(d, tbk, tn):
    """Per-step VMEM the pipeline + kernel need (f32, everything accounted)."""
    s_bytes = 2 * d * tbk * tn * 4          # double-buffered sample tile
    t_bytes = 2 * d * tbk * 128 * 4         # target block: last dim 1 lane-pads to 128
    o_bytes = 2 * 8 * tn * 4                # (1, tn) output block pads to 8 sublanes
    acc_bytes = _round_up(tbk, 8) * tn * 4  # in-kernel diff^2 accumulator
    return s_bytes + t_bytes + o_bytes + acc_bytes


def _pick_tiles(bk, d, n, budget_bytes):
    """Pick (tile_bk, tile_n).

    tile_n: multiple of 128 (or full N when N <= 128), sized for >= 2 grid steps
            (aiming at ~4 so v7x's two TensorCores each still double-buffer),
            capped at 1024 lanes where HBM-roofline utilization saturates.
    tile_bk: full B*K unless VMEM forces blocking; any block is a multiple of 8
             that divides B*K exactly (so no sublane garbage enters the reduce).
    """
    if n <= 128:
        tile_n = n                                            # full extent, 1 step
    else:
        tile_n = max(128, min(1024, _round_up(pl.cdiv(n, 4), 128)))

    tile_bk = bk
    if bk % 8 == 0:
        while (tile_bk > 8
               and _tile_footprint_bytes(d, tile_bk, tile_n) > budget_bytes
               and (tile_bk // 2) % 8 == 0):
            tile_bk //= 2                                     # still divides bk exactly

    while tile_n > 128 and _tile_footprint_bytes(d, tile_bk, tile_n) > budget_bytes:
        tile_n -= 128

    return tile_bk, tile_n


# --------------------------------------------------------------------------------
# forward pass
# --------------------------------------------------------------------------------
def l2_distance_normal(loc, scale, target, key, *, N=256, reduction="mean"):
    """Forward pass of L2Distance for post_dist = Normal.

    loc, scale, target: [B, K, D] float32.  Returns a scalar ('mean' / 'sum').
    """
    if reduction not in ("mean", "sum"):
        raise NotImplementedError("only 'mean' and 'sum' reductions are supported")

    B, K, D = target.shape
    BK = B * K

    # ---- glue: sampling + K-sort, generated directly in (D, B*K, N) layout --------
    eps = jax.random.normal(key, (D, B, K, N), dtype=jnp.float32)
    loc_t = jnp.transpose(loc, (2, 0, 1))                 # (D, B, K)   (tiny transpose)
    scale_t = jnp.transpose(scale, (2, 0, 1))
    samples = loc_t[..., None] + scale_t[..., None] * eps  # (D, B, K, N)
    samples = jnp.sort(samples, axis=2)                    # sort over K per (d, b, n)
    tgt_sorted = jnp.sort(jnp.transpose(target, (2, 0, 1)), axis=2)   # (D, B, K)

    s = samples.reshape(D, BK, N)                           # merge contiguous dims: free
    t = tgt_sorted.reshape(D, BK, 1)

    # ---- tiling --------------------------------------------------------------------
    vmem_limit = _vmem_limit_bytes()
    budget = (vmem_limit * 3) // 4                          # leave pipeline headroom
    tile_bk, tile_n = _pick_tiles(BK, D, N, budget)
    num_n_tiles = pl.cdiv(N, tile_n)
    num_bk_tiles = BK // tile_bk
    need_mask = (N % tile_n) != 0                           # ragged last lane tile

    # ---- kernel --------------------------------------------------------------------
    def kernel(s_ref, t_ref, o_ref):
        # s_ref: (D, tile_bk, tile_n)  samples tile (n on lanes, b*k on sublanes)
        # t_ref: (D, tile_bk, 1)       sorted target (lane-broadcast)
        # o_ref: (1, tile_n)           per-n partial sums, accumulated over bk tiles
        bk_step = pl.program_id(1)

        @pl.when(bk_step == 0)
        def _init():
            o_ref[...] = jnp.zeros_like(o_ref)

        def body(d, acc):
            diff = t_ref[d] - s_ref[d]                     # (tile_bk, tile_n), VALU
            return acc + diff * diff

        sq = lax.fori_loop(0, D, body,
                           jnp.zeros((tile_bk, tile_n), jnp.float32),
                           unroll=True)
        l2 = jnp.sqrt(sq)                                   # (tile_bk, tile_n)
        partial = jnp.sum(l2, axis=0, keepdims=True)        # (1, tile_n) sublane reduce

        if need_mask:
            lane = lax.broadcasted_iota(jnp.int32, (1, tile_n), 1)
            n0 = pl.program_id(0) * tile_n
            partial = jnp.where(n0 + lane < N, partial, 0.0)

        o_ref[...] += partial

    partials = pl.pallas_call(
        kernel,
        out_shape=jax.ShapeDtypeStruct((1, N), jnp.float32),
        grid_spec=pltpu.PrefetchScalarGridSpec(
            num_scalar_prefetch=0,
            grid=(num_n_tiles, num_bk_tiles),               # reduction (bk) axis last
            in_specs=[
                pl.BlockSpec((D, tile_bk, tile_n), lambda nt, bt: (0, bt, nt)),
                pl.BlockSpec((D, tile_bk, 1), lambda nt, bt: (0, bt, 0)),
            ],
            out_specs=pl.BlockSpec((1, tile_n), lambda nt, bt: (0, nt)),
        ),
        compiler_params=pltpu.CompilerParams(
            # lane axis has disjoint output blocks -> shard across v7x's 2 TCs;
            # bk axis accumulates into the same block -> arbitrary.
            dimension_semantics=("parallel", "arbitrary"),
            vmem_limit_bytes=int(vmem_limit),
        ),
    )(s, t)

    total = jnp.sum(partials)                               # tiny (1, N) reduce in XLA
    if reduction == "mean":
        return total / (B * N)
    return total / N                                        # 'sum': mean over N, sum over B


# --------------------------------------------------------------------------------
# pure-JAX reference mirroring the PyTorch forward (Normal branch)
# --------------------------------------------------------------------------------
def _reference(loc, scale, target, key, *, N, reduction="mean"):
    B, K, D = target.shape
    eps = jax.random.normal(key, (D, B, K, N), dtype=jnp.float32)   # same stream as kernel
    eps_bnkd = jnp.transpose(eps, (1, 3, 2, 0))             # [B, N, K, D]
    samples = loc[:, None] + scale[:, None] * eps_bnkd      # Normal samples, [B, N, K, D]
    samples = jnp.sort(samples, axis=-2)                    # sort over K
    tgt = jnp.sort(target[:, None], axis=-2)                # [B, 1, K, D]
    l2 = jnp.sqrt(jnp.sum((tgt - samples) ** 2, axis=-1))   # [B, N, K]
    l2 = jnp.sum(l2, -1)                                    # [B, N]
    l2 = jnp.mean(l2, -1)                                   # [B]
    return jnp.mean(l2) if reduction == "mean" else jnp.sum(l2)


if __name__ == "__main__":
    # small shapes: batch B=2, K=8 points, D=4 dims, N=256 posterior samples
    B, K, D, N = 2, 8, 4, 256
    key = jax.random.PRNGKey(0)
    k_loc, k_scale, k_tgt, k_samp = jax.random.split(key, 4)

    loc = jax.random.normal(k_loc, (B, K, D), dtype=jnp.float32)
    scale = (jax.nn.softplus(jax.random.normal(k_scale, (B, K, D))) + 1e-2).astype(jnp.float32)
    target = jax.random.normal(k_tgt, (B, K, D), dtype=jnp.float32)

    out = l2_distance_normal(loc, scale, target, k_samp, N=N, reduction="mean")
    out = jax.block_until_ready(out)

    ref = _reference(loc, scale, target, k_samp, N=N, reduction="mean")
    assert jnp.allclose(out, ref, rtol=1e-4, atol=1e-4), (out, ref)

    # also exercise the 'sum' reduction path
    out_s = jax.block_until_ready(
        l2_distance_normal(loc, scale, target, k_samp, N=N, reduction="sum"))
    ref_s = _reference(loc, scale, target, k_samp, N=N, reduction="sum")
    assert jnp.allclose(out_s, ref_s, rtol=1e-4, atol=1e-4), (out_s, ref_s)

    print("KERNEL_OK")
</pallas_src>

<mosaic_0001>
module attributes {stable_mosaic.version = 11 : i64} {
  func.func @kernel(%arg0: i32, %arg1: i32, %arg2: memref<4x16x128xf32, #tpu.memory_space<vmem>>, %arg3: memref<4x16x1xf32, #tpu.memory_space<vmem>>, %arg4: memref<1x128xf32, #tpu.memory_space<vmem>>) attributes {dimension_semantics = [#tpu.dimension_semantics<parallel>, #tpu.dimension_semantics<arbitrary>], iteration_bounds = array<i64: 2, 1>, scalar_prefetch = 0 : i64, scratch_operands = 0 : i64, tpu.core_type = #tpu.core_type<tc>, window_params = [{transform_indices = @transform_0, window_bounds = array<i64: 4, 16, 128>}, {transform_indices = @transform_1, window_bounds = array<i64: 4, 16, 1>}, {transform_indices = @transform_2, window_bounds = array<i64: 1, 128>}]} {
    %c0_i32 = arith.constant 0 : i32
    %0 = arith.cmpi eq, %arg1, %c0_i32 : i32
    %1 = arith.extui %0 : i1 to i32
    %c0_i32_0 = arith.constant 0 : i32
    %2 = arith.cmpi ne, %1, %c0_i32_0 : i32
    scf.if %2 {
      %cst_22 = arith.constant 0.000000e+00 : f32
      %50 = vector.broadcast %cst_22 : f32 to vector<1x128xf32>
      %c0_23 = arith.constant 0 : index
      %c0_24 = arith.constant 0 : index
      %51 = vector.load %arg4[%c0_23, %c0_24] : memref<1x128xf32, #tpu.memory_space<vmem>>, vector<1x128xf32>
      tpu.vector_store %arg4[%c0_23, %c0_24], %50 {strides = array<i32>} : memref<1x128xf32, #tpu.memory_space<vmem>>, vector<1x128xf32>,
    } else {
    }
    %cst = arith.constant 0.000000e+00 : f32
    %3 = vector.broadcast %cst : f32 to vector<16x128xf32>
    %c0_i32_1 = arith.constant 0 : i32
    %4 = arith.index_cast %c0_i32_1 : i32 to index
    %c0 = arith.constant 0 : index
    %c0_2 = arith.constant 0 : index
    %5 = vector.load %arg3[%4, %c0, %c0_2] : memref<4x16x1xf32, #tpu.memory_space<vmem>>, vector<1x16x1xf32>
    %6 = vector.shape_cast %5 : vector<1x16x1xf32> to vector<16x1xf32>
    %7 = arith.index_cast %c0_i32_1 : i32 to index
    %c0_3 = arith.constant 0 : index
    %c0_4 = arith.constant 0 : index
    %8 = vector.load %arg2[%7, %c0_3, %c0_4] : memref<4x16x128xf32, #tpu.memory_space<vmem>>, vector<1x16x128xf32>
    %9 = vector.shape_cast %8 : vector<1x16x128xf32> to vector<16x128xf32>
    %10 = vector.broadcast %6 : vector<16x1xf32> to vector<16x128xf32>
    %11 = arith.subf %10, %9 : vector<16x128xf32>
    %12 = arith.mulf %11, %11 : vector<16x128xf32>
    %13 = arith.addf %3, %12 : vector<16x128xf32>
    %c1_i32 = arith.constant 1 : i32
    %14 = arith.index_cast %c1_i32 : i32 to index
    %c0_5 = arith.constant 0 : index
    %c0_6 = arith.constant 0 : index
    %15 = vector.load %arg3[%14, %c0_5, %c0_6] : memref<4x16x1xf32, #tpu.memory_space<vmem>>, vector<1x16x1xf32>
    %16 = vector.shape_cast %15 : vector<1x16x1xf32> to vector<16x1xf32>
    %17 = arith.index_cast %c1_i32 : i32 to index
    %c0_7 = arith.constant 0 : index
    %c0_8 = arith.constant 0 : index
    %18 = vector.load %arg2[%17, %c0_7, %c0_8] : memref<4x16x128xf32, #tpu.memory_space<vmem>>, vector<1x16x128xf32>
    %19 = vector.shape_cast %18 : vector<1x16x128xf32> to vector<16x128xf32>
    %20 = vector.broadcast %16 : vector<16x1xf32> to vector<16x128xf32>
    %21 = arith.subf %20, %19 : vector<16x128xf32>
    %22 = arith.mulf %21, %21 : vector<16x128xf32>
    %23 = arith.addf %13, %22 : vector<16x128xf32>
    %c2_i32 = arith.constant 2 : i32
    %24 = arith.index_cast %c2_i32 : i32 to index
    %c0_9 = arith.constant 0 : index
    %c0_10 = arith.constant 0 : index
    %25 = vector.load %arg3[%24, %c0_9, %c0_10] : memref<4x16x1xf32, #tpu.memory_space<vmem>>, vector<1x16x1xf32>
    %26 = vector.shape_cast %25 : vector<1x16x1xf32> to vector<16x1xf32>
    %27 = arith.index_cast %c2_i32 : i32 to index
    %c0_11 = arith.constant 0 : index
    %c0_12 = arith.constant 0 : index
    %28 = vector.load %arg2[%27, %c0_11, %c0_12] : memref<4x16x128xf32, #tpu.memory_space<vmem>>, vector<1x16x128xf32>
    %29 = vector.shape_cast %28 : vector<1x16x128xf32> to vector<16x128xf32>
    %30 = vector.broadcast %26 : vector<16x1xf32> to vector<16x128xf32>
    %31 = arith.subf %30, %29 : vector<16x128xf32>
    %32 = arith.mulf %31, %31 : vector<16x128xf32>
    %33 = arith.addf %23, %32 : vector<16x128xf32>
    %c3_i32 = arith.constant 3 : i32
    %34 = arith.index_cast %c3_i32 : i32 to index
    %c0_13 = arith.constant 0 : index
    %c0_14 = arith.constant 0 : index
    %35 = vector.load %arg3[%34, %c0_13, %c0_14] : memref<4x16x1xf32, #tpu.memory_space<vmem>>, vector<1x16x1xf32>
    %36 = vector.shape_cast %35 : vector<1x16x1xf32> to vector<16x1xf32>
    %37 = arith.index_cast %c3_i32 : i32 to index
    %c0_15 = arith.constant 0 : index
    %c0_16 = arith.constant 0 : index
    %38 = vector.load %arg2[%37, %c0_15, %c0_16] : memref<4x16x128xf32, #tpu.memory_space<vmem>>, vector<1x16x128xf32>
    %39 = vector.shape_cast %38 : vector<1x16x128xf32> to vector<16x128xf32>
    %40 = vector.broadcast %36 : vector<16x1xf32> to vector<16x128xf32>
    %41 = arith.subf %40, %39 : vector<16x128xf32>
    %42 = arith.mulf %41, %41 : vector<16x128xf32>
    %43 = arith.addf %33, %42 : vector<16x128xf32>
    %c4_i32 = arith.constant 4 : i32
    %44 = math.sqrt %43 : vector<16x128xf32>
    %cst_17 = arith.constant dense<0.000000e+00> : vector<128xf32>
    %45 = vector.multi_reduction <add>, %44, %cst_17 [0] : vector<16x128xf32> to vector<128xf32>
    %46 = vector.shape_cast %45 : vector<128xf32> to vector<1x128xf32>
    %c0_18 = arith.constant 0 : index
    %c0_19 = arith.constant 0 : index
    %47 = vector.load %arg4[%c0_18, %c0_19] : memref<1x128xf32, #tpu.memory_space<vmem>>, vector<1x128xf32>
    %48 = arith.addf %47, %46 : vector<1x128xf32>
    %c0_20 = arith.constant 0 : index
    %c0_21 = arith.constant 0 : index
    %49 = vector.load %arg4[%c0_20, %c0_21] : memref<1x128xf32, #tpu.memory_space<vmem>>, vector<1x128xf32>
    tpu.vector_store %arg4[%c0_20, %c0_21], %48 {strides = array<i32>} : memref<1x128xf32, #tpu.memory_space<vmem>>, vector<1x128xf32>,
    return
  }
  func.func @transform_0(%arg0: i32, %arg1: i32) -> (i32, i32, i32) {
    %c0_i32 = arith.constant 0 : i32
    %c0_i32_0 = arith.constant 0 : i32
    return %c0_i32, %arg1, %arg0 : i32, i32, i32
  }
  func.func @transform_1(%arg0: i32, %arg1: i32) -> (i32, i32, i32) {
    %c0_i32 = arith.constant 0 : i32
    %c0_i32_0 = arith.constant 0 : i32
    %c0_i32_1 = arith.constant 0 : i32
    return %c0_i32, %arg1, %c0_i32_0 : i32, i32, i32
  }
  func.func @transform_2(%arg0: i32, %arg1: i32) -> (i32, i32) {
    %c0_i32 = arith.constant 0 : i32
    %c0_i32_0 = arith.constant 0 : i32
    return %c0_i32, %arg0 : i32, i32
  }
}

</mosaic_0001>

<bundles_post_ra>
// kernel: tpu_custom_call.1
= control target key start
LH: loop header
LB: loop body
LE: loop exit
PB: predicated region body
PF: predicated region fallthrough
CT: control target
= control target key end

     0   :  { %7 = vsyncpa [#allocation3], 0  ;;  %s864_s0 = inlined_call_operand.hbm [shape: f32[4,16,256], index: 0, kind: input, shape index: {}]   ;;  %s865_s1 = inlined_call_operand.vmem [shape: f32[4,16,1], index: 1, kind: input, shape index: {}]   ;;  %s866_s2 = inlined_call_operand.hbm [shape: f32[1,256], index: 2, kind: output, shape index: {}]  }
   0x1   :  { %9 = vsyncpa [#allocation3 + $0x1], 0 }
   0x2   :  { %10 = vsyncpa [#allocation4], 0 }
   0x3   :  { %12 = vsyncpa [#allocation4 + $0x1], 0  ;;  %s652_s9 = smov 0   ;;  %s654_s10 = smov 0  }
   0x4   :  { %s656_s11 = smov 0   ;;  %s658_s12 = smov 0  }
   0x5   :  { %s660_s13 = smov 0   ;;  %s662_s14 = smov 0  }
   0x6 LB: > { %s419_s15 = sadd.s32 4294967295, %s628_s14   ;;  %s420_s16 = sadd.s32 4294967294, %s628_s14   ;;  %s628_s14 = sphi %s662_s14, %s18_s14   ;;  %s624_s13 = sphi %s660_s13, %s880_s13   ;;  %s620_s12 = sphi %s658_s12, %s879_s12   ;;  %s616_s11 = sphi %s656_s11, %s878_s11   ;;  %s612_s10 = sphi %s654_s10, %s877_s10   ;;  %s608_s9 = sphi %s652_s9, %s876_s9  }
   0x7   : > { %s30_s17 = sadd.s32 1, %s624_s13  ;;  %s39_s18 = sadd.s32 1, %s616_s11 }
   0x8   : > { %p32_p0 = scmp.ge.s32.totalorder %s30_s17, 2  ;;  %p46_p1 = scmp.ne.s32.totalorder %s616_s11, %s612_s10 }
   0x9   : > { %p47_p2 = scmp.eq.s32.totalorder %s628_s14, 0  ;;  %p52_p3 = scmp.ne.s32.totalorder %s612_s10, %s608_s9 }
   0xa   : > { %s882_s17 = smov (%p32_p0, %s30_s17), 0  ;;  %p53_p5 = scmp.eq.s32.totalorder %s419_s15, 0 }
   0xb   : > { %p693_p4 = por %p47_p2, %p46_p1  ;;  %s35_s20 = ssub.s32 %s624_s13, %s882_s17 }
   0xc   : > { %p102_p6 = scmp.eq.s32.totalorder %s419_s15, 1  ;;  %p37_p7 = scmp.eq.s32.totalorder %s35_s20, 0 }
   0xd   : > { %p699_p8 = por %p53_p5, %p52_p3  ;;  %p108_p10 = scmp.eq.s32.totalorder %s420_s16, 1 }
   0xe   : > { %p703_p9 = por %p102_p6, %p46_p1  ;;  %p455_p13 = scmp.lt.s32.totalorder %s628_s14, 2 }
   0xf   : > { %s708_s23 = scalar_select %p37_p7, %s616_s11, %s39_s18  }
  0x10   : > { %s870_s22 = scalar_select %p703_p9, 1, 0 }
  0x11   : > { %p710_p11 = por %p108_p10, %p52_p3  ;;  %s137_s25 = sand.u32 1, %s616_s11  }
  0x12   : > { %s424_s26 = sshll.u32 %s137_s25, 6  ;;  %s425_s27 = sshll.u32 %s624_s13, 7 }
  0x13   : > { %s871_s24 = scalar_select %p710_p11, 1, 0 }
  0x14   : > { %s721_s30 = scalar_lea.hbm %s864_s0, %s425_s27  ;;  %s141_s3 = scalar_lea.vmem [#allocation2], %s424_s26 }
  0x15   : > { %s150_s4 = sshll.u32 %s141_s3, 4  ;;  %p727_p0 = pnand %p455_p13, %p693_p4  ;;  %s723_s4 = int_to_ptr.vmem [resolvable:$true] %s150_s4 }
  0x16   : > { %s731_s6 = scalar_lea.sflag [#allocation3], %s137_s25  ;;  %s516_s7 = scalar_lea.hbm %s721_s30, 1024 }
  0x17   : > { %p517_p1 = scmp.ne.s32.totalorder %s721_s30, %s516_s7  ;;  %p518_p2 = pneg %p727_p0 }
  0x18   : > { %s521_s16 = scalar_lea.hbm %s864_s0, 2048  ;;  %p522_p4 = scmp.lt.u32.totalorder %s721_s30, %s864_s0 }
  0x19   : > { %p519_p3 = pnand %p518_p2, %p517_p1  ;;  %p523_p6 = scmp.lt.u32.totalorder %s521_s16, %s516_s7 }
  0x1a   : > { %p525_p10 = scmp.lt.u32.totalorder %s516_s7, %s721_s30 }
  0x1b   : > { %p520_p5 = pneg %p519_p3  ;;  %p524_p7 = por %p523_p6, %p522_p4 }
  0x1d   : > { %p526_p13 = por %p525_p10, %p524_p7 }
  0x1f   : > { %p527_p12 = pnand %p526_p13, %p520_p5 }
  0x21   : > { %530 = shalt.err (!%p527_p12)
}
  0x22   : > { %s531_s20 = scalar_lea.vmem %s723_s4, 1024  ;;  %s630_s25 = smov [#allocation2]  }
  0x23   : > { %p532_p1 = scmp.ne.s32.totalorder %s723_s4, %s531_s20  ;;  %s536_s26 = sshll.u32 %s630_s25, 4  ;;  %s537_s26 = int_to_ptr.vmem [resolvable:$false] %s536_s26 }
  0x24   : > { %s538_s27 = scalar_lea.vmem %s537_s26, 2048  ;;  %p539_p9 = scmp.lt.s32.totalorder %s723_s4, %s537_s26 }
  0x25   : > { %p534_p3 = pnand %p532_p1, %p518_p2  ;;  %p540_p4 = scmp.lt.s32.totalorder %s538_s27, %s531_s20 }
  0x27   : > { %p535_p11 = pneg %p534_p3  ;;  %p541_p6 = por %p540_p4, %p539_p9 }
  0x29   : > { %p542_p7 = pnand %p541_p6, %p535_p11 }
  0x2b   : > { %545 = shalt.err (!%p542_p7)
}
  0x2c   : > { %s631_s28 = smov 256   ;;  %s632_s29 = smov 128  }
  0x2d   : > { %s633_s3 = smov 8   ;;  %p426_p12 = scmp.ge.s32.totalorder %s628_s14, 1 }
  0x2e   : > { %450 = dma.hbm_to_vmem [thread:$0]  (!%p727_p0), %s721_s30, 1024, %s723_s4, %s731_s6, %s631_s28, %s632_s29, %s633_s3  }
  0x2f   : > { %p158_p2 = scmp.lt.s32.totalorder %s628_s14, 3 }
  0x31   : > { %p159_p5 = pnand %p426_p12, %p158_p2 }
  0x32   : > { %s762_s7 = sand.u32 (!%p159_p5), 1, %s612_s10  }
  0x33   : > { %162 = sbr.rel (%p159_p5) target bundleno = 253 (0xfd), region = 28  ;;  %s427_s8 = sshll.u32 (!%p159_p5), %s762_s7, 6 }
  0x34   : > { %s165_s15 = scalar_lea.sflag (!%p159_p5), [#allocation3], %s762_s7  ;;  %s766_s16 = scalar_lea.vmem (!%p159_p5), [#allocation2], %s427_s8 }
  0x3a   : > { %599 = dma.done.wait (%p699_p8), %s165_s15, 1024  }
  0x3b   : > { %601 = vsyncadd (%p699_p8), %s165_s15, 4294966272  ;;  %v634_v0 = vmov 0   ;;  %v428_v1 = vld [vmem:[%s865_s1 + $0x10] sm:$0xff]  ;;  %v205_v2 = vld [vmem:[%s865_s1] sm:$0xff]  ;;  %s797_s30 = scalar_lea.vmem [#allocation5], %s762_s7  ;;  %v635_v9 = vmov 0.0  }
  0x3c   : > { %511 = vset.pattern.permute.xlu1 %v634_v0  ;;  %510 = vset.pattern.permute.xlu0 %v634_v0  ;;  %v429_v3 = vld [vmem:[%s865_s1 + $0x18] sm:$0xff]  ;;  %v206_v4 = vld [vmem:[%s865_s1 + $0x8] sm:$0xff]  ;;  %v432_v6 = vld [vmem:[%s865_s1 + $0x20] sm:$0xff]  ;;  %204 = vst [vmem:[%s797_s30] sm:$0x1] %v635_v9  ;;  %s328_s4 = sshll.u32 %s797_s30, 4  ;;  %s316_s19 = scalar_lea.sflag [#allocation4], %s762_s7  ;;  %s816_s4 = int_to_ptr.vmem [resolvable:$true] %s328_s4 }
  0x3d   : > { %233 = vperm.xlu1 %511, %v428_v1   ;;  %211 = vperm.xlu0 %510, %v205_v2   ;;  %v433_v5 = vld [vmem:[%s865_s1 + $0x28] sm:$0xff]  ;;  %v437_v7 = vld [vmem:[%s865_s1 + $0x38] sm:$0xff]  ;;  %v436_v8 = vld [vmem:[%s865_s1 + $0x30] sm:$0xff]  ;;  %s546_s21 = scalar_lea.vmem %s816_s4, 16  ;;  %p873_p9 = scmp.ne.s32.totalorder %s870_s22, 0 }
  0x3e   : > { %v430_v12 = vld [vmem:[%s766_s16 + $0x10] sm:$0xff]  ;;  %v207_v13 = vld [vmem:[%s766_s16] sm:$0xff]  ;;  %v431_v14 = vld [vmem:[%s766_s16 + $0x18] sm:$0xff]  ;;  %p547_p8 = scmp.ne.s32.totalorder %s816_s4, %s546_s21 }
  0x3f   : > { %v208_v15 = vld [vmem:[%s766_s16 + $0x8] sm:$0xff]  ;;  %v434_v23 = vld [vmem:[%s766_s16 + $0x20] sm:$0xff]  ;;  %v439_v32 = vld [vmem:[%s766_s16 + $0x38] sm:$0xff] }
  0x40   : > { %v435_v22 = vld [vmem:[%s766_s16 + $0x28] sm:$0xff]  ;;  %v438_v33 = vld [vmem:[%s766_s16 + $0x30] sm:$0xff]  ;;  %s440_s16 = sshll.u32 %s620_s12, 4  ;;  %p548_p11 = pnand %p547_p8, %p873_p9 }
  0x41   : > { %238 = vperm.xlu1 %511, %v429_v3   ;;  %216 = vperm.xlu0 %510, %v206_v4   ;;  %s814_s18 = scalar_lea.hbm %s866_s2, %s440_s16  ;;  %s636_s12 = smov [#allocation5]  }
  0x42   : > { %p549_p0 = pneg %p548_p11  ;;  %s550_s20 = sshll.u32 %s636_s12, 4  ;;  %s551_s20 = int_to_ptr.vmem [resolvable:$false] %s550_s20 }
  0x43   : > { %v312_v0 = vld [vmem:[%s797_s30] sm:$0x1]  ;;  %s552_s25 = scalar_lea.vmem %s551_s20, 32  ;;  %p553_p10 = scmp.lt.s32.totalorder %s816_s4, %s551_s20 }
  0x44   : > { %p554_p13 = scmp.lt.s32.totalorder %s552_s25, %s546_s21 }
  0x45   : > { %260 = vperm.xlu1 %511, %v433_v5   ;;  %255 = vperm.xlu0 %510, %v432_v6  }
  0x46   : > { %p555_p1 = por %p554_p13, %p553_p10 }
  0x48   : > { %p556_p3 = pnand %p555_p1, %p549_p0 }
  0x49   : > { %282 = vperm.xlu1 %511, %v437_v7   ;;  %277 = vperm.xlu0 %510, %v436_v8  }
  0xbc   : > { %v234_v10 = vpop.permute.xlu1 %233  ;;  %v212_v11 = vpop.permute.xlu0 %211 }
  0xbd   : > { %v241_v16 = vsub.f32 %v234_v10, %v430_v12  ;;  %v219_v17 = vsub.f32 %v212_v11, %v207_v13 }
  0xbf   : > { %v243_v24 = vmul.f32 %v241_v16, %v241_v16  ;;  %v221_v25 = vmul.f32 %v219_v17, %v219_v17 }
  0xc0   : > { %v239_v18 = vpop.permute.xlu1 %238  ;;  %v217_v19 = vpop.permute.xlu0 %216 }
  0xc1   : > { %v242_v20 = vsub.f32 %v239_v18, %v431_v14  ;;  %v220_v21 = vsub.f32 %v217_v19, %v208_v15  ;;  %v245_v38 = vadd.f32 %v243_v24, %v221_v25 }
  0xc3   : > { %v244_v28 = vmul.f32 %v242_v20, %v242_v20  ;;  %v222_v29 = vmul.f32 %v220_v21, %v220_v21 }
  0xc4   : > { %v261_v26 = vpop.permute.xlu1 %260  ;;  %v256_v27 = vpop.permute.xlu0 %255 }
  0xc5   : > { %v264_v30 = vsub.f32 %v261_v26, %v435_v22  ;;  %v263_v31 = vsub.f32 %v256_v27, %v434_v23  ;;  %v246_v39 = vadd.f32 %v244_v28, %v222_v29 }
  0xc7   : > { %v266_v34 = vmul.f32 %v264_v30, %v264_v30  ;;  %v265_v35 = vmul.f32 %v263_v31, %v263_v31 }
  0xc8   : > { %v283_v36 = vpop.permute.xlu1 %282  ;;  %v278_v37 = vpop.permute.xlu0 %277 }
  0xc9   : > { %v286_v40 = vsub.f32 %v283_v36, %v439_v32  ;;  %v285_v41 = vsub.f32 %v278_v37, %v438_v33  ;;  %v268_v42 = vadd.f32 %v266_v34, %v246_v39  ;;  %v267_v43 = vadd.f32 %v265_v35, %v245_v38 }
  0xcb   : > { %v288_v44 = vmul.f32 %v286_v40, %v286_v40  ;;  %v287_v45 = vmul.f32 %v285_v41, %v285_v41 }
  0xcd   : > { %v290_v46 = vadd.f32 %v288_v44, %v268_v42  ;;  %v289_v47 = vadd.f32 %v287_v45, %v267_v43 }
  0xcf   : > { %512 = vrsqrt.f32 %v290_v46  ;;  %vm300_vm0 = vcmp.eq.f32.partialorder %v290_v46, inf  ;;  %v303_v51 = vand.u32 2147483648, %v290_v46  ;;  %vm302_vm1 = vcmp.eq.f32.partialorder %v290_v46, 0.0 }
  0xd0   : > { %514 = vrsqrt.f32 %v289_v47  ;;  %vm293_vm2 = vcmp.eq.f32.partialorder %v289_v47, inf  ;;  %v296_v54 = vand.u32 2147483648, %v289_v47  ;;  %vm295_vm3 = vcmp.eq.f32.partialorder %v289_v47, 0.0 }
  0xd9   : > { %v513_v48 = vpop.eup %512 }
  0xda   : > { %v515_v49 = vpop.eup %514  ;;  %v299_v50 = vmul.f32 %v513_v48, %v290_v46 }
  0xdb   : > { %v292_v52 = vmul.f32 %v515_v49, %v289_v47 }
  0xdc   : > { %v301_v53 = vsel %vm300_vm0, %v290_v46, %v299_v50 }
  0xdd   : > { %v294_v55 = vsel %vm293_vm2, %v289_v47, %v292_v52  ;;  %v304_v56 = vsel %vm302_vm1, %v303_v51, %v301_v53 }
  0xde   : > { %v297_v57 = vsel %vm295_vm3, %v296_v54, %v294_v55 }
  0xdf   : > { %v305_v58 = vadd.f32 %v304_v56, %v297_v57 }
  0xe1   : > { %v306_v59 = vrot.slane %v305_v58, 4 }
  0xe3   : > { %v307_v60 = vadd.f32 %v306_v59, %v305_v58 }
  0xe5   : > { %v308_v61 = vrot.slane %v307_v60, 2 }
  0xe7   : > { %v309_v62 = vadd.f32 %v308_v61, %v307_v60 }
  0xe9   : > { %v310_v63 = vrot.slane %v309_v62, 1 }
  0xeb   : > { %v311_v1 = vadd.f32 %v310_v63, %v309_v62 }
  0xed   : > { %v313_v2 = vadd.f32 %v312_v0, %v311_v1 }
  0xef   : > { %314 = vst [vmem:[%s797_s30] sm:$0x1] %v313_v2 }
  0xf0   : > { %559 = shalt.err (!%p556_p3)
}
  0xf1   : > { %s560_s7 = scalar_lea.hbm %s814_s18, 16  ;;  %s564_s28 = scalar_lea.hbm %s866_s2, 32 }
  0xf2   : > { %p561_p4 = scmp.ne.s32.totalorder %s814_s18, %s560_s7  ;;  %p565_p12 = scmp.lt.u32.totalorder %s814_s18, %s866_s2 }
  0xf3   : > { %p566_p2 = scmp.lt.u32.totalorder %s564_s28, %s560_s7  ;;  %p568_p8 = scmp.lt.u32.totalorder %s560_s7, %s814_s18 }
  0xf4   : > { %p562_p6 = pnand %p561_p4, %p873_p9 }
  0xf5   : > { %p567_p5 = por %p566_p2, %p565_p12 }
  0xf6   : > { %p563_p7 = pneg %p562_p6 }
  0xf7   : > { %p569_p11 = por %p568_p8, %p567_p5 }
  0xf9   : > { %p570_p0 = pnand %p569_p11, %p563_p7 }
  0xfb   : > { %573 = shalt.err (!%p570_p0)
}
  0xfc   : > { %445 = dma.vmem_to_hbm [thread:$0]  (%p873_p9), %s816_s4, 16, %s814_s18, %s316_s19  }
  0xfd PF: > { %s340_s8 = sand.u32 1, %s608_s9   ;;  %p874_p10 = scmp.ne.s32.totalorder %s871_s24, 0 }
  0xfe   : > { %p875_p13 = scmp.ge.s32.totalorder %s628_s14, 2  ;;  %s341_s15 = scalar_lea.sflag [#allocation4], %s340_s8 }
 0x100   : > { %p452_p1 = pnand %p875_p13, %p874_p10 }
 0x102   : > { %603 = dma.done.wait (!%p452_p1), %s341_s15, 16  }
 0x103   : > { %605 = vsyncadd (!%p452_p1), %s341_s15, 4294967280  ;;  %s18_s14 = sadd.s32 1, %s628_s14   ;;  %s876_s9 = smov %s612_s10 }
 0x104   : > { %p15_p3 = scmp.ge.s32.totalorder %s18_s14, 4   ;;  %s877_s10 = smov %s616_s11 }
 0x105   : > { %s878_s11 = smov %s708_s23  ;;  %s879_s12 = smov %s624_s13 }
 0x106   : > { %s880_s13 = smov %s882_s17  ;;  %17 = sbr.rel (!%p15_p3) target bundleno = 6 (0x6), region = 86 }
 0x10d   :  { %345 = vsyncpa [#allocation3], 1 }
 0x10e   :  { %347 = vsyncpa [#allocation3 + $0x1], 1 }
 0x10f   :  { %348 = vsyncpa [#allocation4], 1 }
 0x110   :  { %350 = vsyncpa [#allocation4 + $0x1], 1 }

</bundles_post_ra>
